<compile_context>
chip_gen: v6e
topology: v6e:2x2x1
jax: 0.10.0
libtpu: 0.0.40
codegen_flags: <defaults>
</compile_context>

<pallas_src>
import jax
import jax.numpy as jnp
from jax.experimental import pallas as pl
from jax.experimental.pallas import tpu as pltpu

_LANE = 128
_SUBLANE = 8


def _round_up(x, m):
    return ((x + m - 1) // m) * m


def _choose_tiles(m2):
    # Lane (output) tile: multiple of 128; contraction tile: multiple of 8.
    # Caps keep the double-buffered V block at <= 2 * 8 MB which fits the
    # scoped-VMEM budget on v5e / v6e / v7x with plenty of headroom.
    tn = min(_round_up(m2, _LANE), 2048)
    tk = min(_round_up(m2, _SUBLANE), 1024)
    return tk, tn


def hf_e2_matvec_kernel(rho_ref, v_ref, s_ref):
    """S[0, j-block] += rho_vec[0, k-block] @ Vm[k-block, j-block].

    grid = (num_col_blocks, num_row_blocks); axis 1 is the contraction.
    The output block index depends only on axis 0, so the (1, Tn) output
    block stays resident in VMEM across the whole k loop and acts as the
    f32 accumulator (initialized at k == 0).
    """
    k = pl.program_id(1)

    @pl.when(k == 0)
    def _init():
        s_ref[...] = jnp.zeros_like(s_ref)

    s_ref[...] += jnp.dot(rho_ref[...], v_ref[...],
                          preferred_element_type=jnp.float32)


@jax.jit
def hf_energy(h, A, V):
    M, N = A.shape
    M2 = M * M

    # TODO(synk): QR factorization has no clean Pallas/Mosaic equivalent; done in JAX.
    C, _ = jnp.linalg.qr(A.astype(jnp.float32))       # (M, N)
    rho = C @ C.T                                     # (M, M), symmetric
    E1 = jnp.dot(h.astype(rho.dtype), jnp.diagonal(rho))

    # Vm[a*M + c, b*M + d] = V[a, b, c, d]  (lane-dense M^2-wide layout for the kernel)
    Vm = jnp.transpose(V.astype(jnp.float32), (0, 2, 1, 3)).reshape(M2, M2)
    rho_vec = rho.reshape(1, M2)                      # rho_vec[0, x*M + y] = rho[x, y]

    tk, tn = _choose_tiles(M2)
    k_pad = _round_up(M2, tk)
    n_pad = _round_up(M2, tn)
    Vm_p = jnp.pad(Vm, ((0, k_pad - M2), (0, n_pad - M2)))
    rho_k = jnp.pad(rho_vec, ((0, 0), (0, k_pad - M2)))

    grid = (n_pad // tn, k_pad // tk)                 # (output blocks, contraction blocks)
    S = pl.pallas_call(
        hf_e2_matvec_kernel,
        out_shape=jax.ShapeDtypeStruct((1, n_pad), jnp.float32),
        grid_spec=pltpu.PrefetchScalarGridSpec(
            num_scalar_prefetch=0,
            grid=grid,
            in_specs=[
                pl.BlockSpec((1, tk), lambda j, k: (0, k)),   # rho_vec contraction slice
                pl.BlockSpec((tk, tn), lambda j, k: (k, j)),  # Vm block (the M^4 stream)
            ],
            out_specs=pl.BlockSpec((1, tn), lambda j, k: (0, j)),
        ),
        compiler_params=pltpu.CompilerParams(
            dimension_semantics=("parallel", "arbitrary"),
            vmem_limit_bytes=32 * 1024 * 1024,
        ),
    )(rho_k, Vm_p)

    # S[0, b*M + d] = sum_{a,c} V[a,b,c,d] * rho[c,a]   (rho is symmetric)
    # E2 = 0.5 * sum_{b,d} S[b*M+d] * rho[d,b]  -- O(M^2) final dot in the wrapper.
    E2 = 0.5 * jnp.sum(S[0, :M2] * rho_vec[0])
    return E1 + E2


def hf_energy_reference(h, A, V):
    C, _ = jnp.linalg.qr(A)
    rho = C @ C.T
    E1 = jnp.dot(h, jnp.diagonal(rho))
    E2 = 0.5 * jnp.einsum('abcd,ca,db->', V, rho, rho)
    return E1 + E2


if __name__ == "__main__":
    M, N = 16, 4                       # M orbitals, N particles
    key = jax.random.PRNGKey(0)
    k_h, k_A, k_idx, k_val = jax.random.split(key, 4)

    # h_vec and parameter A (deterministic stand-in for torch.randn init).
    h = jax.random.normal(k_h, (M,), dtype=jnp.float32)
    A = jax.random.normal(k_A, (M, N), dtype=jnp.float32)

    # Synthetic sparse V_dict -> dense V_tensor (M, M, M, M), built in-script.
    n_entries = 64
    idx = jax.random.randint(k_idx, (n_entries, 4), 0, M)
    vals = jax.random.normal(k_val, (n_entries,), dtype=jnp.float32)
    V = jnp.zeros((M, M, M, M), dtype=jnp.float32)
    V = V.at[idx[:, 0], idx[:, 1], idx[:, 2], idx[:, 3]].set(vals)

    energy = hf_energy(h, A, V)
    jax.block_until_ready(energy)

    ref = hf_energy_reference(h, A, V)
    assert jnp.allclose(energy, ref, rtol=1e-4, atol=1e-4), (energy, ref)
    print("KERNEL_OK")
</pallas_src>

<mosaic_0001>
module attributes {stable_mosaic.version = 11 : i64} {
  func.func @hf_e2_matvec_kernel(%arg0: i32, %arg1: i32, %arg2: memref<1x256xf32, #tpu.memory_space<vmem>>, %arg3: memref<256x256xf32, #tpu.memory_space<vmem>>, %arg4: memref<1x256xf32, #tpu.memory_space<vmem>>) attributes {dimension_semantics = [#tpu.dimension_semantics<parallel>, #tpu.dimension_semantics<arbitrary>], iteration_bounds = array<i64: 1, 1>, scalar_prefetch = 0 : i64, scratch_operands = 0 : i64, tpu.core_type = #tpu.core_type<tc>, window_params = [{transform_indices = @transform_0, window_bounds = array<i64: 1, 256>}, {transform_indices = @transform_1, window_bounds = array<i64: 256, 256>}, {transform_indices = @transform_2, window_bounds = array<i64: 1, 256>}]} {
    %c0_i32 = arith.constant 0 : i32
    %0 = arith.cmpi eq, %arg1, %c0_i32 : i32
    %1 = arith.extui %0 : i1 to i32
    %c0_i32_0 = arith.constant 0 : i32
    %2 = arith.cmpi ne, %1, %c0_i32_0 : i32
    scf.if %2 {
      %cst_8 = arith.constant 0.000000e+00 : f32
      %9 = vector.broadcast %cst_8 : f32 to vector<1x256xf32>
      %c0_9 = arith.constant 0 : index
      %c0_10 = arith.constant 0 : index
      %10 = vector.load %arg4[%c0_9, %c0_10] : memref<1x256xf32, #tpu.memory_space<vmem>>, vector<1x256xf32>
      tpu.vector_store %arg4[%c0_9, %c0_10], %9 {strides = array<i32>} : memref<1x256xf32, #tpu.memory_space<vmem>>, vector<1x256xf32>,
    } else {
    }
    %c0 = arith.constant 0 : index
    %c0_1 = arith.constant 0 : index
    %3 = vector.load %arg4[%c0, %c0_1] : memref<1x256xf32, #tpu.memory_space<vmem>>, vector<1x256xf32>
    %c0_2 = arith.constant 0 : index
    %c0_3 = arith.constant 0 : index
    %4 = vector.load %arg2[%c0_2, %c0_3] : memref<1x256xf32, #tpu.memory_space<vmem>>, vector<1x256xf32>
    %c0_4 = arith.constant 0 : index
    %c0_5 = arith.constant 0 : index
    %5 = vector.load %arg3[%c0_4, %c0_5] : memref<256x256xf32, #tpu.memory_space<vmem>>, vector<256x256xf32>
    %cst = arith.constant dense<0.000000e+00> : vector<1x256xf32>
    %6 = tpu.matmul %4, %5, %cst {dimension_numbers = #tpu.dot_dimension_numbers<[1], [0], [0], [1], [0, 0, 1, 1], [], []>} : vector<1x256xf32>, vector<256x256xf32>, vector<1x256xf32> -> vector<1x256xf32>
    %7 = arith.addf %3, %6 : vector<1x256xf32>
    %c0_6 = arith.constant 0 : index
    %c0_7 = arith.constant 0 : index
    %8 = vector.load %arg4[%c0_6, %c0_7] : memref<1x256xf32, #tpu.memory_space<vmem>>, vector<1x256xf32>
    tpu.vector_store %arg4[%c0_6, %c0_7], %7 {strides = array<i32>} : memref<1x256xf32, #tpu.memory_space<vmem>>, vector<1x256xf32>,
    return
  }
  func.func @transform_0(%arg0: i32, %arg1: i32) -> (i32, i32) {
    %c0_i32 = arith.constant 0 : i32
    %c0_i32_0 = arith.constant 0 : i32
    return %c0_i32, %arg1 : i32, i32
  }
  func.func @transform_1(%arg0: i32, %arg1: i32) -> (i32, i32) {
    %c0_i32 = arith.constant 0 : i32
    return %arg1, %arg0 : i32, i32
  }
  func.func @transform_2(%arg0: i32, %arg1: i32) -> (i32, i32) {
    %c0_i32 = arith.constant 0 : i32
    %c0_i32_0 = arith.constant 0 : i32
    return %c0_i32, %arg0 : i32, i32
  }
}

</mosaic_0001>

<bundles_post_ra>
// kernel: custom-call.6
= control target key start
LH: loop header
LB: loop body
LE: loop exit
PB: predicated region body
PF: predicated region fallthrough
CT: control target
= control target key end

     0   :  { %v401_v2 = vmov 0.0   ;;  %s424_s13 = smov 0   ;;  %s508_s0 = inlined_call_operand.vmem [shape: f32[16,4], index: 0, kind: input, shape index: {}]   ;;  %s509_s1 = inlined_call_operand.vmem [shape: f32[16,4], index: 1, kind: output, shape index: {0}]   ;;  %s510_s2 = inlined_call_operand.vmem [shape: f32[4], index: 2, kind: output, shape index: {1}]  }
   0x1   :  { %v34_v0 = vld [vmem:[%s508_s0] sm:$0xff]  ;;  %v36_v1 = vld [vmem:[%s508_s0 + $0x8] sm:$0xff]  ;;  %47 = vst [vmem:[#allocation2] sm:$0x1] %v401_v2 }
   0x2   :  { %42 = vst [vmem:[#allocation1] sm:$0xff] %v34_v0  ;;  %46 = vst [vmem:[#allocation1 + $0x8] sm:$0xff] %v36_v1 }
   0x3 LB: > { %v55_v3 = vlaneseq  ;;  %v433_v6 = vstv %s399_s13  ;;  %s92_s0 = scalar_lea.vmem [#allocation1], %s399_s13  ;;  %s128_s14 = smov [#allocation1]  ;;  %s399_s13 = sphi %s424_s13, %s53_s13  }
   0x4   : > { %s168_s15 = scalar_lea.vmem [#allocation4], %s399_s13  ;;  %s184_s16 = smov [#allocation1] }
   0x5   : > { %v430_v5 = vshrl.u32 %v55_v3, 7  ;;  %v459_v54 = vand.u32 127, %v55_v3  ;;  %s185_s17 = smov [#allocation4] }
   0x7   : > { %vm59_vm0 = vcmp.gt.s32.totalorder %v430_v5, %v433_v6  ;;  %v66_v8 = vadd.s32 8, %v430_v5  ;;  %v131_v5 = vmov %v430_v5  ;;  %vm463_vm12 = vcmp.eq.s32.totalorder %v459_v54, %v433_v6 }
   0x8   : > { %v150_v50 = vadd.s32 8, %v131_v5  ;;  %vm135_vm10 = vcmp.gt.s32.totalorder %v131_v5, %v433_v6  ;;  %v188_v5 = vmov %v430_v5 }
   0x9   : > { %v54_v4 = vld [vmem:[#allocation1] sm:$0xff]  ;;  %v63_v7 = vld [vmem:[#allocation1 + $0x8] sm:$0xff]  ;;  %vm68_vm1 = vcmp.gt.s32.totalorder %v66_v8, %v433_v6 }
   0xa   : > { %v60_v9 = vsel %vm59_vm0, %v54_v4, 0.0  ;;  %v71_v11 = vsel %vm68_vm1, %v63_v7, 0.0  ;;  %v93_v20 = vld [vmem:[%s92_s0] ss:$0 sm:$0xff]  ;;  %vm152_vm8 = vcmp.gt.s32.totalorder %v150_v50, %v433_v6  ;;  %vm153_vm9 = vcmp.lt.s32.totalorder %v150_v50, 16  ;;  %v367_v53 = vld [vmem:[%s128_s14 + $0x8] sm:$0xff] }
   0xb   : > { %v61_v10 = vmul.f32 %v60_v9, %v60_v9  ;;  %v72_v12 = vmul.f32 %v71_v11, %v71_v11  ;;  %v94_v21 = vand.u32 2147483647, %v93_v20  ;;  %vm119_vm7 = vcmp.lt.f32.partialorder %v93_v20, 0.0  ;;  %v132_v52 = vld [vmem:[%s128_s14] sm:$0xff]  ;;  %vm154_vm11 = vmand %vm152_vm8, %vm153_vm9  ;;  %v181_v7 = vld [vmem:[#allocation2] ss:$0 sm:$0xff] }
   0xc   : > { %v136_v56 = vsel %vm135_vm10, %v132_v52, 0.0  ;;  %v155_v57 = vsel %vm154_vm11, %v367_v53, 0.0  ;;  %vm221_vm0 = vcmp.gt.s32.totalorder %v459_v54, %v433_v6 }
   0xd   : > { %v73_v13 = vadd.f32 %v72_v12, %v61_v10  ;;  %v95_v26 = vmax.f32 %v94_v21, 0.0  ;;  %v402_v12 = vmov 1.0  }
   0xf   : > { %v74_v14 = vrot.slane %v73_v13, 4 }
  0x11   : > { %v75_v15 = vadd.f32 %v74_v14, %v73_v13  ;;  %v193_v13 = vadd.s32 8, %v188_v5  ;;  %v191_v14 = vld [vmem:[%s184_s16] sm:$0xff]  ;;  %v212_v5 = vmov %v430_v5 }
  0x12   : > { %vm229_vm14 = vcmp.ge.s32.totalorder %v212_v5, %v433_v6 }
  0x13   : > { %v76_v16 = vrot.slane %v75_v15, 2  ;;  %vm199_vm13 = vcmp.lt.s32.totalorder %v193_v13, 16  ;;  %vm230_vm1 = vmand %vm463_vm12, %vm229_vm14 }
  0x15   : > { %v77_v17 = vadd.f32 %v76_v16, %v75_v15  ;;  %v369_v15 = vld [vmem:[%s184_s16 + $0x8] sm:$0xff]  ;;  %s208_s16 = smov %s184_s16 }
  0x16   : > { %s254_s18 = scalar_lea.vmem %s208_s16, %s399_s13  ;;  %s53_s13 = sadd.s32 1, %s399_s13  }
  0x17   : > { %v78_v18 = vrot.slane %v77_v17, 1  ;;  %p50_p0 = scmp.ge.s32.totalorder %s53_s13, 4  }
  0x19   : > { %v439_v19 = vadd.f32 %v78_v18, %v77_v17 }
  0x1b   : > { %383 = vrsqrt.f32 %v439_v19  ;;  %vm82_vm2 = vcmp.eq.f32.partialorder %v439_v19, inf  ;;  %v85_v23 = vand.u32 2147483648, %v439_v19  ;;  %vm84_vm3 = vcmp.eq.f32.partialorder %v439_v19, 0.0 }
  0x28   : > { %v384_v22 = vpop.eup %383 }
  0x29   : > { %v81_v24 = vmul.f32 %v384_v22, %v439_v19 }
  0x2b   : > { %v83_v25 = vsel %vm82_vm2, %v439_v19, %v81_v24 }
  0x2c   : > { %v86_v27 = vsel %vm84_vm3, %v85_v23, %v83_v25 }
  0x2d   : > { %v96_v28 = vand.u32 2147483647, %v86_v27  ;;  %v233_v27 = vadd.s32 8, %v212_v5 }
  0x2f   : > { %v97_v29 = vmax.f32 %v95_v26, %v96_v28  ;;  %vm250_vm15 = vcmp.ge.s32.totalorder %v233_v27, %v433_v6 }
  0x30   : > { %vm251_vm2 = vmand %vm463_vm12, %vm250_vm15 }
  0x31   : > { %385 = vrcp.f32 %v97_v29  ;;  %vm109_vm6 = vcmp.eq.f32.partialorder %v97_v29, 0.0 }
  0x3e   : > { %v386_v30 = vpop.eup %385 }
  0x3f   : > { %v99_v31 = vmul.f32 %v386_v30, %v94_v21  ;;  %v102_v32 = vmul.f32 0.0, %v386_v30  ;;  %v106_v33 = vmul.f32 %v386_v30, %v96_v28 }
  0x41   : > { %v100_v34 = vmul.f32 %v99_v31, %v99_v31  ;;  %v103_v35 = vmul.f32 %v102_v32, %v102_v32  ;;  %v107_v36 = vmul.f32 %v106_v33, %v106_v33  ;;  %v371_v33 = vld [vmem:[%s208_s16 + $0x8] sm:$0xff] }
  0x43   : > { %v104_v37 = vadd.f32 %v103_v35, %v100_v34 }
  0x45   : > { %v108_v38 = vadd.f32 %v107_v36, %v104_v37 }
  0x47   : > { %387 = vrsqrt.f32 %v108_v38  ;;  %vm112_vm4 = vcmp.eq.f32.partialorder %v108_v38, inf  ;;  %v115_v40 = vand.u32 2147483648, %v108_v38  ;;  %vm114_vm5 = vcmp.eq.f32.partialorder %v108_v38, 0.0 }
  0x54   : > { %v388_v39 = vpop.eup %387 }
  0x55   : > { %v111_v41 = vmul.f32 %v388_v39, %v108_v38 }
  0x57   : > { %v113_v42 = vsel %vm112_vm4, %v108_v38, %v111_v41 }
  0x58   : > { %v116_v43 = vsel %vm114_vm5, %v115_v40, %v113_v42 }
  0x59   : > { %v117_v44 = vmul.f32 %v116_v43, %v97_v29  ;;  %v219_v29 = vld [vmem:[%s208_s16] sm:$0xff] }
  0x5b   : > { %v118_v45 = vsel %vm109_vm6, 0.0, %v117_v44 }
  0x5c   : > { %v120_v46 = vxor.u32 2147483648, %v118_v45 }
  0x5e   : > { %v121_v47 = vsel %vm119_vm7, %v118_v45, %v120_v46 }
  0x5f   : > { %v452_v48 = vsel %vm84_vm3, %v93_v20, %v121_v47  ;;  %389 = vrcp.f32 %v121_v47  ;;  %v122_v51 = vsub.f32 %v121_v47, %v93_v20 }
  0x60   : > { %v127_v49 = vsub.f32 %v93_v20, %v452_v48 }
  0x62   : > { %391 = vrcp.f32 %v127_v49 }
  0x6c   : > { %v390_v55 = vpop.eup %389 }
  0x6d   : > { %v124_v58 = vmul.f32 %v390_v55, %v122_v51 }
  0x6f   : > { %v392_v59 = vpop.eup %391  ;;  %v126_v61 = vsel %vm84_vm3, 0.0, %v124_v58 }
  0x70   : > { %v138_v62 = vmul.f32 %v392_v59, %v136_v56  ;;  %v157_v63 = vmul.f32 %v392_v59, %v155_v57  ;;  %v174_v0 = vsel %vm463_vm12, %v126_v61, 0.0 }
  0x71   : > { %175 = vadd.xlane.f32.xlu1 %v174_v0 }
  0x72   : > { %v139_v1 = vsel %vm84_vm3, 0.0, %v138_v62  ;;  %v158_v2 = vsel %vm84_vm3, 0.0, %v157_v63 }
  0x73   : > { %v144_v3 = vsel %vm463_vm12, %v139_v1, 0.0  ;;  %v163_v4 = vsel %vm463_vm12, %v158_v2, 0.0 }
  0x74   : > { %145 = vadd.xlane.f32.xlu0 %v144_v3 }
  0x78   : > { %164 = vadd.xlane.f32.xlu0 %v163_v4 }
  0xfa   : > { %v176_v8 = vpop.xlane.xlu1 %175 }
  0xfb   : > { %v182_v9 = vsel %vm463_vm12, %v176_v8, %v181_v7 }
  0xfc   : > { %183 = vst [vmem:[#allocation2] sm:$0x1] %v182_v9 }
  0xfd   : > { %v146_v10 = vpop.xlane.xlu0 %145 }
  0xfe   : > { %147 = vst [vmem:[#allocation4] sm:$0xff] %v146_v10 }
 0x101   : > { %v165_v11 = vpop.xlane.xlu0 %164 }
 0x102   : > { %167 = vst [vmem:[#allocation4 + $0x8] sm:$0xff] %v165_v11 }
 0x103   : > { %169 = vst [vmem:[%s168_s15] sm:$0x1] %v402_v12  ;;  %v266_v42 = vld [vmem:[#allocation2] sm:$0x1] (%p50_p0) }
 0x104   :  { %269 = vst [vmem:[#allocation3] sm:$0x1] (%p50_p0), %v266_v42 }
 0x10a   : > { %v190_v16 = vld [vmem:[%s185_s17] sm:$0xff]  ;;  %v368_v17 = vld [vmem:[%s185_s17 + $0x8] sm:$0xff]  ;;  %s209_s17 = smov %s185_s17 }
 0x10b   : > { %v192_v18 = vmul.f32 %v191_v14, %v190_v16  ;;  %v198_v19 = vmul.f32 %v369_v15, %v368_v17  ;;  %v217_v31 = vld [vmem:[%s209_s17] sm:$0xff]  ;;  %v370_v32 = vld [vmem:[%s209_s17 + $0x8] sm:$0xff]  ;;  %v325_v45 = vld [vmem:[#allocation3] sm:$0x1] (%p50_p0) }
 0x10c   :  { %326 = vst [vmem:[%s510_s2] sm:$0x1] (%p50_p0), %v325_v45 }
 0x10d   : > { %v200_v20 = vsel %vm199_vm13, %v198_v19, 0.0 }
 0x10e   : > { %v201_v21 = vadd.f32 %v200_v20, %v192_v18 }
 0x110   : > { %v202_v22 = vrot.slane %v201_v21, 4 }
 0x112   : > { %v203_v23 = vadd.f32 %v202_v22, %v201_v21 }
 0x114   : > { %v204_v24 = vrot.slane %v203_v23, 2 }
 0x116   : > { %v205_v25 = vadd.f32 %v204_v24, %v203_v23 }
 0x118   : > { %v206_v26 = vrot.slane %v205_v25, 1 }
 0x11a   : > { %v207_v28 = vadd.f32 %v206_v26, %v205_v25 }
 0x11c   : > { %v213_v30 = vmul.f32 %v207_v28, %v176_v8 }
 0x11e   : > { %v218_v34 = vmul.f32 %v217_v31, %v213_v30  ;;  %v238_v35 = vmul.f32 %v370_v32, %v213_v30 }
 0x120   : > { %v222_v36 = vsub.f32 %v219_v29, %v218_v34  ;;  %v243_v5 = vsub.f32 %v371_v33, %v238_v35 }
 0x122   : > { %v223_v37 = vsel %vm221_vm0, %v222_v36, %v219_v29  ;;  %v244_v38 = vsel %vm221_vm0, %v243_v5, %v371_v33 }
 0x123   : > { %v231_v39 = vsel %vm230_vm1, %v217_v31, %v223_v37  ;;  %v252_v40 = vsel %vm251_vm2, %v370_v32, %v244_v38 }
 0x124   : > { %232 = vst [vmem:[%s208_s16] sm:$0xff] %v231_v39  ;;  %372 = vst [vmem:[%s208_s16 + $0x8] sm:$0xff] %v252_v40 }
 0x129   :  { %52 = sbr.rel (!%p50_p0) target bundleno = 3 (0x3), region = 148 }
 0x12b   : > { %v255_v41 = vld [vmem:[%s254_s18] ss:$0 sm:$0xff] }
 0x12c   : > { %v260_v6 = vsel %vm463_vm12, %v452_v48, %v255_v41 }
 0x12d   : > { %261 = vst [vmem:[%s254_s18] sm:$0x1] %v260_v6 }
 0x134   :  { %v300_v43 = vld [vmem:[#allocation1] sm:$0xff]  ;;  %v302_v44 = vld [vmem:[#allocation1 + $0x8] sm:$0xff] }
 0x135   :  { %301 = vst [vmem:[%s509_s1] sm:$0xff] %v300_v43  ;;  %303 = vst [vmem:[%s509_s1 + $0x8] sm:$0xff] %v302_v44 }

// kernel: custom-call.8
= control target key start
LH: loop header
LB: loop body
LE: loop exit
PB: predicated region body
PF: predicated region fallthrough
CT: control target
= control target key end

     0   :  { %v70_v1 = vlaneseq  ;;  %vm84_vm1 = vcmask 31744   ;;  %s257_s0 = inlined_call_operand.vmem [shape: f32[4,4], index: 0, kind: input, shape index: {}]   ;;  %s258_s1 = inlined_call_operand.vmem [shape: f32[4,4], index: 1, kind: output, shape index: {}]  }
   0x1   :  { %v63_v0 = vld [vmem:[%s257_s0] sm:$0xf] }
   0x2   :  { %64 = vst [vmem:[#allocation1] sm:$0xf] %v63_v0  ;;  %v71_v3 = vand.u32 127, %v70_v1  ;;  %v73_v4 = vshrl.u32 %v70_v1, 7 }
   0x4   :  { %vm79_vm0 = vcmp.eq.s32.totalorder %v71_v3, 0  ;;  %vm75_vm2 = vcmp.eq.s32.totalorder %v71_v3, %v73_v4  ;;  %vm88_vm3 = vcmp.eq.s32.totalorder %v71_v3, 1  ;;  %vm99_vm4 = vcmp.eq.s32.totalorder %v71_v3, 2 }
   0x5   :  { %vm110_vm5 = vcmp.eq.s32.totalorder %v71_v3, 3 }
   0x9   :  { %v68_v2 = vld [vmem:[#allocation1] sm:$0xf] }
   0xa   :  { %69 = vst [vmem:[#allocation0] sm:$0xf] %v68_v2 }
  0x11   :  { %v76_v5 = vld [vmem:[#allocation0] sm:$0xff] }
  0x12   :  { %v83_v6 = vld [vmem:[#allocation0 + $0x1] ss:$0 sm:$0xff]  ;;  %v80_v7 = vsel %vm79_vm0, %v76_v5, 1.0  ;;  %v94_v11 = vld [vmem:[#allocation0 + $0x2] ss:$0 sm:$0xff] }
  0x13   :  { %v85_v8 = vsel %vm84_vm1, %v83_v6, 0.0  ;;  %v81_v9 = vsel %vm75_vm2, %v80_v7, 0.0  ;;  %v96_v12 = vsel %vm84_vm1, %v94_v11, 0.0  ;;  %v105_v16 = vld [vmem:[#allocation0 + $0x3] ss:$0 sm:$0xff] }
  0x14   :  { %v89_v10 = vmul.f32 %v85_v8, %v81_v9  ;;  %v107_v17 = vsel %vm84_vm1, %v105_v16, 0.0 }
  0x16   :  { %90 = vadd.xlane.f32.xlu0 %v89_v10 }
  0x9f   :  { %v91_v13 = vpop.xlane.xlu0 %90 }
  0xa0   :  { %v92_v14 = vsel %vm88_vm3, %v91_v13, %v81_v9 }
  0xa1   :  { %v100_v15 = vmul.f32 %v96_v12, %v92_v14 }
  0xa3   :  { %101 = vadd.xlane.f32.xlu0 %v100_v15 }
 0x12c   :  { %v102_v18 = vpop.xlane.xlu0 %101 }
 0x12d   :  { %v103_v19 = vsel %vm99_vm4, %v102_v18, %v92_v14 }
 0x12e   :  { %v111_v20 = vmul.f32 %v107_v17, %v103_v19 }
 0x130   :  { %112 = vadd.xlane.f32.xlu1 %v111_v20 }
 0x1b9   :  { %v113_v21 = vpop.xlane.xlu1 %112 }
 0x1ba   :  { %v114_v22 = vsel %vm110_vm5, %v113_v21, %v103_v19 }
 0x1bb   :  { %115 = vst [vmem:[#allocation2] sm:$0xff] %v114_v22 }
 0x1c2   :  { %v120_v23 = vld [vmem:[#allocation2] sm:$0xf] }
 0x1c3   :  { %123 = vst [vmem:[#allocation3] sm:$0xf] %v120_v23 }
 0x1ca   :  { %v185_v24 = vld [vmem:[#allocation3] sm:$0xf] }
 0x1cb   :  { %186 = vst [vmem:[%s258_s1] sm:$0xf] %v185_v24 }

// kernel: hf_energy.1
= control target key start
LH: loop header
LB: loop body
LE: loop exit
PB: predicated region body
PF: predicated region fallthrough
CT: control target
= control target key end

     0   :  { %v15_v13 = vlaneseq  ;;  %s430_s1 = inlined_call_operand.vmem [shape: f32[256,256], index: 1, kind: input, shape index: {}]   ;;  %s431_s0 = inlined_call_operand.vmem [shape: f32[1,256], index: 0, kind: input, shape index: {}]   ;;  %s432_s2 = inlined_call_operand.vmem [shape: f32[1,256], index: 2, kind: output, shape index: {}]  }
   0x1   :  { %v53_v0 = vld [vmem:[%s430_s1 + $0xf8] sm:$0xff]  ;;  %v52_v1 = vld [vmem:[%s430_s1 + $0xf0] sm:$0xff]  ;;  %v51_v2 = vld [vmem:[%s430_s1 + $0xe8] sm:$0xff] }
   0x2   :  { %97 = vmatprep.subr.mxu0 %v53_v0  ;;  %v50_v3 = vld [vmem:[%s430_s1 + $0xe0] sm:$0xff]  ;;  %v49_v4 = vld [vmem:[%s430_s1 + $0xd8] sm:$0xff]  ;;  %v48_v5 = vld [vmem:[%s430_s1 + $0xd0] sm:$0xff]  ;;  %v267_v18 = vshrl.u32 %v15_v13, 7  ;;  %vm17_vm0 = vcmp.lt.s32.totalorder %v15_v13, 256 }
   0x3   :  { %98 = vmatpush1.msra.mxu0 %v52_v1  ;;  %v47_v6 = vld [vmem:[%s430_s1 + $0xc8] sm:$0xff]  ;;  %v46_v7 = vld [vmem:[%s430_s1 + $0xc0] sm:$0xff]  ;;  %v45_v8 = vld [vmem:[%s430_s1 + $0xb8] sm:$0xff] }
   0x4   :  { %99 = vmatprep.subr.mxu0 %v51_v2  ;;  %v44_v9 = vld [vmem:[%s430_s1 + $0xb0] sm:$0xff]  ;;  %v43_v10 = vld [vmem:[%s430_s1 + $0xa8] sm:$0xff]  ;;  %v42_v11 = vld [vmem:[%s430_s1 + $0xa0] sm:$0xff]  ;;  %v93_v23 = vsub.s32 1, %v267_v18  ;;  %v89_v1 = vsub.s32 0, %v267_v18 }
   0x5   :  { %100 = vmatpush1.msra.mxu0 %v50_v3  ;;  %v41_v12 = vld [vmem:[%s430_s1 + $0x98] sm:$0xff]  ;;  %v40_v14 = vld [vmem:[%s430_s1 + $0x90] sm:$0xff]  ;;  %v39_v15 = vld [vmem:[%s430_s1 + $0x88] sm:$0xff] }
   0x6   :  { %101 = vmatprep.subr.mxu0 %v49_v4  ;;  %v38_v16 = vld [vmem:[%s430_s1 + $0x80] sm:$0xff]  ;;  %v37_v17 = vld [vmem:[%s430_s1 + $0x78] sm:$0xff]  ;;  %v36_v19 = vld [vmem:[%s430_s1 + $0x70] sm:$0xff] }
   0x7   :  { %102 = vmatpush1.msra.mxu0 %v48_v5  ;;  %v35_v20 = vld [vmem:[%s430_s1 + $0x68] sm:$0xff]  ;;  %v34_v21 = vld [vmem:[%s430_s1 + $0x60] sm:$0xff]  ;;  %v33_v22 = vld [vmem:[%s430_s1 + $0x58] sm:$0xff] }
   0x8   :  { %103 = vmatprep.subr.mxu0 %v47_v6  ;;  %v32_v24 = vld [vmem:[%s430_s1 + $0x50] sm:$0xff]  ;;  %v31_v25 = vld [vmem:[%s430_s1 + $0x48] sm:$0xff]  ;;  %v30_v26 = vld [vmem:[%s430_s1 + $0x40] sm:$0xff] }
   0x9   :  { %104 = vmatpush1.msra.mxu0 %v46_v7  ;;  %v294_v27 = vld [vmem:[%s431_s0] sm:$0x3]  ;;  %v29_v28 = vld [vmem:[%s430_s1 + $0x38] sm:$0xff]  ;;  %v28_v30 = vld [vmem:[%s430_s1 + $0x30] sm:$0xff]  ;;  %v198_v7 = vmov 0.0  }
   0xa   :  { %105 = vmatprep.subr.mxu0 %v45_v8  ;;  %v94_v29 = vrot.slane %v294_v27, %v93_v23  ;;  %v27_v31 = vld [vmem:[%s430_s1 + $0x28] sm:$0xff]  ;;  %v26_v32 = vld [vmem:[%s430_s1 + $0x20] sm:$0xff]  ;;  %v25_v33 = vld [vmem:[%s430_s1 + $0x18] sm:$0xff]  ;;  %v90_v6 = vrot.slane %v294_v27, %v89_v1  ;;  %19 = vst.msk [vmem:[%s432_s2] sm:$0x3] %vm17_vm0, %v198_v7 }
   0xb   :  { %106 = vmatpush1.msra.mxu0 %v44_v9  ;;  %v24_v34 = vld [vmem:[%s430_s1 + $0x10] sm:$0xff]  ;;  %v23_v35 = vld [vmem:[%s430_s1 + $0x8] sm:$0xff]  ;;  %v22_v36 = vld [vmem:[%s430_s1] sm:$0xff]  ;;  %v199_v8 = vmov 1966171168  }
   0xc   :  { %107 = vmatprep.subr.mxu0 %v43_v10  ;;  %161 = vmatprep.mubr.f32.mxu0 %v94_v29  ;;  %v85_v37 = vld [vmem:[%s430_s1 + $0x1f8] sm:$0xff]  ;;  %v84_v38 = vld [vmem:[%s430_s1 + $0x1f0] sm:$0xff]  ;;  %v83_v39 = vld [vmem:[%s430_s1 + $0x1e8] sm:$0xff]  ;;  %v172_v9 = vunpack.c.l.s4 %v199_v8 }
   0xd   :  { %108 = vmatpush1.msra.mxu0 %v42_v11  ;;  %v82_v40 = vld [vmem:[%s430_s1 + $0x1e0] sm:$0xff]  ;;  %v81_v41 = vld [vmem:[%s430_s1 + $0x1d8] sm:$0xff]  ;;  %v80_v42 = vld [vmem:[%s430_s1 + $0x1d0] sm:$0xff] }
   0xe   :  { %109 = vmatprep.subr.mxu0 %v41_v12  ;;  %v79_v43 = vld [vmem:[%s430_s1 + $0x1c8] sm:$0xff]  ;;  %v78_v44 = vld [vmem:[%s430_s1 + $0x1c0] sm:$0xff]  ;;  %v77_v45 = vld [vmem:[%s430_s1 + $0x1b8] sm:$0xff]  ;;  %v173_v10 = vunpack.c.0.s8 %v172_v9 }
   0xf   :  { %110 = vmatpush1.msra.mxu0 %v40_v14  ;;  %v76_v46 = vld [vmem:[%s430_s1 + $0x1b0] sm:$0xff]  ;;  %v75_v47 = vld [vmem:[%s430_s1 + $0x1a8] sm:$0xff]  ;;  %v74_v48 = vld [vmem:[%s430_s1 + $0x1a0] sm:$0xff] }
  0x10   :  { %111 = vmatprep.subr.mxu0 %v39_v15  ;;  %v73_v49 = vld [vmem:[%s430_s1 + $0x198] sm:$0xff]  ;;  %v72_v50 = vld [vmem:[%s430_s1 + $0x190] sm:$0xff]  ;;  %v71_v51 = vld [vmem:[%s430_s1 + $0x188] sm:$0xff]  ;;  %v176_v12 = vsub.s32 %v173_v10, %v267_v18 }
  0x11   :  { %112 = vmatpush1.msra.mxu0 %v38_v16  ;;  %v70_v52 = vld [vmem:[%s430_s1 + $0x180] sm:$0xff]  ;;  %v69_v53 = vld [vmem:[%s430_s1 + $0x178] sm:$0xff]  ;;  %v68_v54 = vld [vmem:[%s430_s1 + $0x170] sm:$0xff] }
  0x12   :  { %113 = vmatprep.subr.mxu0 %v37_v17  ;;  %v67_v55 = vld [vmem:[%s430_s1 + $0x168] sm:$0xff]  ;;  %v66_v56 = vld [vmem:[%s430_s1 + $0x160] sm:$0xff]  ;;  %v65_v57 = vld [vmem:[%s430_s1 + $0x158] sm:$0xff] }
  0x13   :  { %114 = vmatpush1.msra.mxu0 %v36_v19  ;;  %v64_v58 = vld [vmem:[%s430_s1 + $0x150] sm:$0xff]  ;;  %v63_v59 = vld [vmem:[%s430_s1 + $0x148] sm:$0xff]  ;;  %v62_v60 = vld [vmem:[%s430_s1 + $0x140] sm:$0xff] }
  0x14   :  { %115 = vmatprep.subr.mxu0 %v35_v20  ;;  %v61_v61 = vld [vmem:[%s430_s1 + $0x138] sm:$0xff]  ;;  %v60_v62 = vld [vmem:[%s430_s1 + $0x130] sm:$0xff]  ;;  %v59_v63 = vld [vmem:[%s430_s1 + $0x128] sm:$0xff] }
  0x15   :  { %116 = vmatpush1.msra.mxu0 %v34_v21  ;;  %v58_v0 = vld [vmem:[%s430_s1 + $0x120] sm:$0xff]  ;;  %v57_v2 = vld [vmem:[%s430_s1 + $0x118] sm:$0xff]  ;;  %v56_v3 = vld [vmem:[%s430_s1 + $0x110] sm:$0xff] }
  0x16   :  { %117 = vmatprep.subr.mxu0 %v33_v22  ;;  %v55_v4 = vld [vmem:[%s430_s1 + $0x108] sm:$0xff]  ;;  %v54_v5 = vld [vmem:[%s430_s1 + $0x100] sm:$0xff] }
  0x17   :  { %118 = vmatpush1.msra.mxu0 %v32_v24  ;;  %v20_v17 = vld [vmem:[%s432_s2] sm:$0x3] }
  0x18   :  { %119 = vmatprep.subr.mxu0 %v31_v25 }
  0x19   :  { %120 = vmatpush1.msra.mxu0 %v30_v26 }
  0x1a   :  { %121 = vmatprep.subr.mxu0 %v29_v28 }
  0x1b   :  { %122 = vmatpush1.msra.mxu0 %v28_v30 }
  0x1c   :  { %123 = vmatprep.subr.mxu0 %v27_v31 }
  0x1d   :  { %124 = vmatpush1.msra.mxu0 %v26_v32 }
  0x1e   :  { %125 = vmatprep.subr.mxu0 %v25_v33 }
  0x1f   :  { %126 = vmatpush1.msra.mxu0 %v24_v34 }
  0x20   :  { %127 = vmatprep.subr.mxu0 %v23_v35 }
  0x21   :  { %128 = vmatpush1.msra.mxu0 %v22_v36 }
  0x22   :  { %129 = vmatprep.subr.mxu0 %v85_v37 }
  0x23   :  { %130 = vmatpush2.msra.mxu0 %v84_v38 }
  0x24   :  { %131 = vmatprep.subr.mxu0 %v83_v39 }
  0x25   :  { %132 = vmatpush2.msra.mxu0 %v82_v40 }
  0x26   :  { %133 = vmatprep.subr.mxu0 %v81_v41 }
  0x27   :  { %134 = vmatpush2.msra.mxu0 %v80_v42 }
  0x28   :  { %135 = vmatprep.subr.mxu0 %v79_v43 }
  0x29   :  { %136 = vmatpush2.msra.mxu0 %v78_v44 }
  0x2a   :  { %137 = vmatprep.subr.mxu0 %v77_v45 }
  0x2b   :  { %138 = vmatpush2.msra.mxu0 %v76_v46 }
  0x2c   :  { %139 = vmatprep.subr.mxu0 %v75_v47 }
  0x2d   :  { %140 = vmatpush2.msra.mxu0 %v74_v48 }
  0x2e   :  { %141 = vmatprep.subr.mxu0 %v73_v49 }
  0x2f   :  { %142 = vmatpush2.msra.mxu0 %v72_v50 }
  0x30   :  { %143 = vmatprep.subr.mxu0 %v71_v51 }
  0x31   :  { %144 = vmatpush2.msra.mxu0 %v70_v52 }
  0x32   :  { %145 = vmatprep.subr.mxu0 %v69_v53 }
  0x33   :  { %146 = vmatpush2.msra.mxu0 %v68_v54 }
  0x34   :  { %147 = vmatprep.subr.mxu0 %v67_v55 }
  0x35   :  { %148 = vmatpush2.msra.mxu0 %v66_v56 }
  0x36   :  { %149 = vmatprep.subr.mxu0 %v65_v57 }
  0x37   :  { %150 = vmatpush2.msra.mxu0 %v64_v58 }
  0x38   :  { %151 = vmatprep.subr.mxu0 %v63_v59 }
  0x39   :  { %152 = vmatpush2.msra.mxu0 %v62_v60 }
  0x3a   :  { %153 = vmatprep.subr.mxu0 %v61_v61 }
  0x3b   :  { %154 = vmatpush2.msra.mxu0 %v60_v62 }
  0x3c   :  { %155 = vmatprep.subr.mxu0 %v59_v63 }
  0x3d   :  { %156 = vmatpush2.msra.mxu0 %v58_v0 }
  0x3e   :  { %157 = vmatprep.subr.mxu0 %v57_v2 }
  0x3f   :  { %158 = vmatpush2.msra.mxu0 %v56_v3 }
  0x40   :  { %159 = vmatprep.subr.mxu0 %v55_v4 }
  0x41   :  { %160 = vmatpush2.msra.mxu0 %v54_v5 }
  0x42   :  { %162 = vmatmul.mubr.f32.vlgmr.msra.gmra.mxu0 %v90_v6 }
 0x102   :  { %v163_v11 = vpop.f32.mrf.mxu0 }
 0x104   :  { %v165_v14 = vpop.f32.mrf.mxu0 }
 0x105   :  { %v170_v15 = vcombine.low %v163_v11, %v165_v14 }
 0x107   :  { %v177_v16 = vrot.slane %v170_v15, %v176_v12 }
 0x109   :  { %v184_v19 = vrot.slane %v177_v16, %v176_v12 }
 0x10b   :  { %v186_v13 = vadd.f32 %v184_v19, %v20_v17 }
 0x10d   :  { %191 = vst.msk [vmem:[%s432_s2] sm:$0x3] %vm17_vm0, %v186_v13 }

</bundles_post_ra>
